<compile_context>
chip_gen: v5e
topology: v5e:2x2
jax: 0.10.0
libtpu: 0.0.40
codegen_flags: <defaults>
</compile_context>

<pallas_src>
import functools

import jax
import jax.numpy as jnp
from jax import lax
from jax.experimental import pallas as pl
from jax.experimental.pallas import tpu as pltpu

LANES = 128
BASE_MAX_TILE_ROWS = 8192   # rows per input block for 4-byte dtypes (4 MiB)
CHUNK_ROWS = 512            # in-kernel compute chunk (bounds VMEM temporaries)


def _cdiv(a: int, b: int) -> int:
    return (a + b - 1) // b


def _round_up(x: int, m: int) -> int:
    return _cdiv(x, m) * m


def _tensorcores_per_chip() -> int:
    """2 for megacore / dual-TC chips (v4, v5p, v7x), else 1."""
    try:
        kind = jax.devices()[0].device_kind.lower()
    except Exception:  # pragma: no cover - defensive
        return 1
    return 2 if any(tag in kind for tag in ("v4", "v5p", "v7")) else 1


def _bce_kernel(yp_ref, yt_ref, part_ref, *, tile_rows: int, chunk_rows: int,
                steps_per_split: int, total_steps: int, full_rows: int,
                rem: int, need_mask: bool, binary_targets: bool):
    c = pl.program_id(0)
    s = pl.program_id(1)
    gstep = c * steps_per_split + s

    @pl.when(s == 0)
    def _init():
        part_ref[...] = jnp.zeros_like(part_ref)

    n_chunks = tile_rows // chunk_rows

    def chunk_term(i):
        start = pl.multiple_of(i * chunk_rows, chunk_rows)
        yp = yp_ref[pl.ds(start, chunk_rows), :].astype(jnp.float32)
        yt = yt_ref[pl.ds(start, chunk_rows), :].astype(jnp.float32)
        if binary_targets:
            # y_true guaranteed in {0, 1}: one log per element instead of two.
            return jnp.log(jnp.where(yt >= 0.5, yp, 1.0 - yp))
        # y_true * log(y_pred) + (1 - y_true) * log(1 - y_pred)
        # TODO(synk): PyTorch's nn.BCELoss clamps log at -100; this module uses
        # raw torch.log, so we keep raw-log semantics (inputs must be in (0,1)).
        return yt * jnp.log(yp) + (1.0 - yt) * jnp.log(1.0 - yp)

    def fold(t):
        # (chunk_rows, 128) -> (8, 128): pure vreg adds (8,128-tile aligned).
        return t.reshape(chunk_rows // 8, 8, LANES).sum(axis=0)

    def accumulate_plain():
        def body(i, acc):
            return acc + fold(chunk_term(i))
        part_ref[...] += lax.fori_loop(
            0, n_chunks, body, jnp.zeros((8, LANES), jnp.float32))

    # is_real is False only for the clamped duplicate step that appears when an
    # odd step count is split across two cores; is_last marks the tile that
    # contains the ragged boundary.
    is_real = gstep < total_steps
    is_last = gstep == total_steps - 1

    if need_mask:
        @pl.when(jnp.logical_and(is_real, jnp.logical_not(is_last)))
        def _bulk():
            accumulate_plain()

        @pl.when(is_last)
        def _boundary():
            base_row = gstep * tile_rows

            def body(i, acc):
                t = chunk_term(i)
                row = (base_row + i * chunk_rows
                       + lax.broadcasted_iota(jnp.int32, t.shape, 0))
                col = lax.broadcasted_iota(jnp.int32, t.shape, 1)
                m = (row < full_rows) | ((row == full_rows) & (col < rem))
                return acc + fold(jnp.where(m, t, 0.0))

            part_ref[...] += lax.fori_loop(
                0, n_chunks, body, jnp.zeros((8, LANES), jnp.float32))
    else:
        @pl.when(is_real)
        def _all():
            accumulate_plain()


def custom_bce_loss(y_pred: jax.Array, y_true: jax.Array, *,
                    binary_targets: bool = False,
                    max_tile_rows: int | None = None,
                    chunk_rows: int | None = None,
                    force_splits: int | None = None) -> jax.Array:
    assert y_pred.shape == y_true.shape, "y_pred / y_true must have same shape"
    total = int(y_pred.size)
    assert total > 0

    isize_p = jnp.dtype(y_pred.dtype).itemsize
    isize_t = jnp.dtype(y_true.dtype).itemsize
    itemsize = min(isize_p, isize_t)
    sub = {4: 8, 2: 16, 1: 32}.get(itemsize, 8)  # sublane packing granularity

    rows2d = _cdiv(total, LANES)     # rows of the lane-dense 2-D view
    full_rows = total // LANES       # fully-valid 128-lane rows
    rem = total % LANES              # valid lanes in the final partial row

    if chunk_rows is None:
        chunk_rows = CHUNK_ROWS
    if max_tile_rows is None:
        max_tile_rows = (BASE_MAX_TILE_ROWS * 4) // itemsize  # ~4 MiB / block

    rows_aligned = _round_up(rows2d, sub)
    tile_rows = min(rows_aligned, max_tile_rows)
    if tile_rows < chunk_rows:
        chunk_rows = tile_rows               # single chunk per tile
    else:
        tile_rows = _round_up(tile_rows, chunk_rows)
    assert tile_rows % 8 == 0 and chunk_rows % 8 == 0
    assert tile_rows % chunk_rows == 0

    total_steps = _cdiv(rows2d, tile_rows)

    n_tc = _tensorcores_per_chip() if force_splits is None else force_splits
    n_splits = 2 if (n_tc >= 2 and total_steps >= 2) else 1
    steps_per_split = _cdiv(total_steps, n_splits)

    # The last grid step needs a mask if its block extends past the valid rows
    # and/or the final 128-lane row is only partially valid.
    need_mask = (rows2d % tile_rows != 0) or (rem != 0)

    # Lane-dense 2-D view.  Only the final partial 128-lane row (if any) is
    # padded (< 128 elements; XLA fuses it with the flatten reshape) and those
    # padded elements are masked out inside the kernel's last step.
    yp_flat = y_pred.reshape(-1)
    yt_flat = y_true.reshape(-1)
    lane_pad = rows2d * LANES - total
    if lane_pad:
        yp_flat = jnp.concatenate(
            [yp_flat, jnp.full((lane_pad,), 0.5, yp_flat.dtype)])
        yt_flat = jnp.concatenate(
            [yt_flat, jnp.zeros((lane_pad,), yt_flat.dtype)])
    yp2d = yp_flat.reshape(rows2d, LANES)
    yt2d = yt_flat.reshape(rows2d, LANES)

    kernel = functools.partial(
        _bce_kernel, tile_rows=tile_rows, chunk_rows=chunk_rows,
        steps_per_split=steps_per_split, total_steps=total_steps,
        full_rows=full_rows, rem=rem, need_mask=need_mask,
        binary_targets=binary_targets)

    def in_map(c, s):
        # Clamp so an odd step count split across two cores never yields a
        # fully out-of-bounds block; the duplicate step re-uses the previous
        # block index (no extra DMA) and its accumulation is skipped in-kernel.
        return (jnp.minimum(c * steps_per_split + s, total_steps - 1), 0)

    in_spec = pl.BlockSpec((tile_rows, LANES), in_map)

    cost = pl.CostEstimate(
        flops=5 * total,
        transcendentals=(1 if binary_targets else 2) * total,
        bytes_accessed=total * (isize_p + isize_t) + n_splits * 8 * LANES * 4)

    partials = pl.pallas_call(
        kernel,
        out_shape=jax.ShapeDtypeStruct((n_splits * 8, LANES), jnp.float32),
        grid_spec=pltpu.PrefetchScalarGridSpec(
            num_scalar_prefetch=0,
            grid=(n_splits, steps_per_split),
            in_specs=[in_spec, in_spec],
            out_specs=pl.BlockSpec((8, LANES), lambda c, s: (c, 0)),
        ),
        compiler_params=pltpu.CompilerParams(
            dimension_semantics=("parallel", "arbitrary"),
            vmem_limit_bytes=32 * 1024 * 1024,
        ),
        cost_estimate=cost,
    )(yp2d, yt2d)

    # Single cross-lane reduce + negate/scale on a tiny (n_splits*8, 128) array.
    return -jnp.sum(partials) / jnp.float32(total)


def _reference(y_pred, y_true):
    return -jnp.mean(
        y_true * jnp.log(y_pred) + (1.0 - y_true) * jnp.log(1.0 - y_pred))


if __name__ == "__main__":
    key = jax.random.PRNGKey(0)
    k1, k2 = jax.random.split(key)

    # Case 1: lane-aligned dense prediction map (NCHW-style probabilities).
    shape = (2, 4, 16, 16)  # 2048 elements
    y_pred = jax.random.uniform(
        k1, shape, jnp.float32, minval=1e-3, maxval=1.0 - 1e-3)
    y_true = (jax.random.uniform(k2, shape, jnp.float32) > 0.5).astype(
        jnp.float32)

    loss = custom_bce_loss(y_pred, y_true)
    jax.block_until_ready(loss)
    ref = _reference(y_pred, y_true)
    assert jnp.allclose(loss, ref, rtol=1e-5, atol=1e-6), (loss, ref)

    # Binary-target fast path (one log per element) on the same data.
    loss_bin = custom_bce_loss(y_pred, y_true, binary_targets=True)
    jax.block_until_ready(loss_bin)
    assert jnp.allclose(loss_bin, ref, rtol=1e-5, atol=1e-6), (loss_bin, ref)

    # Case 2: ragged size (not a multiple of 128) -> boundary-mask path.
    shape2 = (3, 5, 17, 11)  # 2805 elements
    yp2 = jax.random.uniform(
        k1, shape2, jnp.float32, minval=1e-3, maxval=1.0 - 1e-3)
    yt2 = (jax.random.uniform(k2, shape2, jnp.float32) > 0.5).astype(
        jnp.float32)
    loss2 = custom_bce_loss(yp2, yt2)
    jax.block_until_ready(loss2)
    assert jnp.allclose(loss2, _reference(yp2, yt2), rtol=1e-5, atol=1e-6)

    # Case 3: force multi-step + two-way split + clamped duplicate step
    # (small tiles so the tiny test array spans several grid steps).
    loss3 = custom_bce_loss(yp2, yt2, max_tile_rows=8, force_splits=2)
    jax.block_until_ready(loss3)
    assert jnp.allclose(loss3, _reference(yp2, yt2), rtol=1e-5, atol=1e-6)

    # Case 4: exercise the multi-chunk in-kernel accumulation loop.
    shape4 = (2, 4, 32, 32)  # 8192 elements -> 64 lane rows
    yp4 = jax.random.uniform(
        k1, shape4, jnp.float32, minval=1e-3, maxval=1.0 - 1e-3)
    yt4 = (jax.random.uniform(k2, shape4, jnp.float32) > 0.5).astype(
        jnp.float32)
    loss4 = custom_bce_loss(yp4, yt4, max_tile_rows=32, chunk_rows=16,
                            force_splits=2)
    jax.block_until_ready(loss4)
    assert jnp.allclose(loss4, _reference(yp4, yt4), rtol=1e-5, atol=1e-6)

    print("KERNEL_OK")
</pallas_src>

<mosaic_0001>
module attributes {stable_mosaic.version = 11 : i64} {
  func.func @_bce_kernel(%arg0: i32, %arg1: i32, %arg2: memref<16x128xf32, #tpu.memory_space<vmem>>, %arg3: memref<16x128xf32, #tpu.memory_space<vmem>>, %arg4: memref<8x128xf32, #tpu.memory_space<vmem>>) attributes {dimension_semantics = [#tpu.dimension_semantics<parallel>, #tpu.dimension_semantics<arbitrary>], iteration_bounds = array<i64: 1, 1>, scalar_prefetch = 0 : i64, scratch_operands = 0 : i64, tpu.core_type = #tpu.core_type<tc>, window_params = [{transform_indices = @transform_0, window_bounds = array<i64: 16, 128>}, {transform_indices = @transform_1, window_bounds = array<i64: 16, 128>}, {transform_indices = @transform_2, window_bounds = array<i64: 8, 128>}]} {
    %c1_i32 = arith.constant 1 : i32
    %0 = arith.muli %arg0, %c1_i32 : i32
    %1 = arith.addi %0, %arg1 : i32
    %c0_i32 = arith.constant 0 : i32
    %2 = arith.cmpi eq, %arg1, %c0_i32 : i32
    %3 = arith.extui %2 : i1 to i32
    %c0_i32_0 = arith.constant 0 : i32
    %4 = arith.cmpi ne, %3, %c0_i32_0 : i32
    scf.if %4 {
      %cst = arith.constant 0.000000e+00 : f32
      %8 = vector.broadcast %cst : f32 to vector<8x128xf32>
      %c0 = arith.constant 0 : index
      %c0_3 = arith.constant 0 : index
      %9 = vector.load %arg4[%c0, %c0_3] : memref<8x128xf32, #tpu.memory_space<vmem>>, vector<8x128xf32>
      tpu.vector_store %arg4[%c0, %c0_3], %8 {strides = array<i32>} : memref<8x128xf32, #tpu.memory_space<vmem>>, vector<8x128xf32>,
    } else {
    }
    %c1_i32_1 = arith.constant 1 : i32
    %5 = arith.cmpi slt, %1, %c1_i32_1 : i32
    %6 = arith.extui %5 : i1 to i32
    %c0_i32_2 = arith.constant 0 : i32
    %7 = arith.cmpi ne, %6, %c0_i32_2 : i32
    scf.if %7 {
      %c0 = arith.constant 0 : index
      %c0_3 = arith.constant 0 : index
      %8 = vector.load %arg4[%c0, %c0_3] : memref<8x128xf32, #tpu.memory_space<vmem>>, vector<8x128xf32>
      %cst = arith.constant 0.000000e+00 : f32
      %9 = vector.broadcast %cst : f32 to vector<8x128xf32>
      %c0_i32_4 = arith.constant 0 : i32
      %c16_i32 = arith.constant 16 : i32
      %10 = arith.muli %c0_i32_4, %c16_i32 : i32
      %11 = tpu.assume_multiple %10, 16 : i32
      %12 = arith.index_cast %11 : i32 to index
      %c0_5 = arith.constant 0 : index
      %13 = vector.load %arg2[%12, %c0_5] : memref<16x128xf32, #tpu.memory_space<vmem>>, vector<16x128xf32>
      %14 = arith.index_cast %11 : i32 to index
      %c0_6 = arith.constant 0 : index
      %15 = vector.load %arg3[%14, %c0_6] : memref<16x128xf32, #tpu.memory_space<vmem>>, vector<16x128xf32>
      %16 = math.log %13 : vector<16x128xf32>
      %17 = arith.mulf %15, %16 : vector<16x128xf32>
      %cst_7 = arith.constant 1.000000e+00 : f32
      %18 = vector.broadcast %cst_7 : f32 to vector<16x128xf32>
      %19 = arith.subf %18, %15 : vector<16x128xf32>
      %cst_8 = arith.constant 1.000000e+00 : f32
      %20 = vector.broadcast %cst_8 : f32 to vector<16x128xf32>
      %21 = arith.subf %20, %13 : vector<16x128xf32>
      %22 = math.log %21 : vector<16x128xf32>
      %23 = arith.mulf %19, %22 : vector<16x128xf32>
      %24 = arith.addf %17, %23 : vector<16x128xf32>
      %25 = vector.shape_cast %24 : vector<16x128xf32> to vector<2x8x128xf32>
      %cst_9 = arith.constant dense<0.000000e+00> : vector<8x128xf32>
      %26 = vector.multi_reduction <add>, %25, %cst_9 [0] : vector<2x8x128xf32> to vector<8x128xf32>
      %27 = arith.addf %9, %26 : vector<8x128xf32>
      %c1_i32_10 = arith.constant 1 : i32
      %28 = arith.addf %8, %27 : vector<8x128xf32>
      %c0_11 = arith.constant 0 : index
      %c0_12 = arith.constant 0 : index
      %29 = vector.load %arg4[%c0_11, %c0_12] : memref<8x128xf32, #tpu.memory_space<vmem>>, vector<8x128xf32>
      tpu.vector_store %arg4[%c0_11, %c0_12], %28 {strides = array<i32>} : memref<8x128xf32, #tpu.memory_space<vmem>>, vector<8x128xf32>,
    } else {
    }
    return
  }
  func.func @transform_0(%arg0: i32, %arg1: i32) -> (i32, i32) {
    %c1_i32 = arith.constant 1 : i32
    %0 = arith.muli %arg0, %c1_i32 : i32
    %1 = arith.addi %0, %arg1 : i32
    %c0_i32 = arith.constant 0 : i32
    %2 = arith.minsi %1, %c0_i32 : i32
    %c0_i32_0 = arith.constant 0 : i32
    %c0_i32_1 = arith.constant 0 : i32
    return %2, %c0_i32_0 : i32, i32
  }
  func.func @transform_1(%arg0: i32, %arg1: i32) -> (i32, i32) {
    %c1_i32 = arith.constant 1 : i32
    %0 = arith.muli %arg0, %c1_i32 : i32
    %1 = arith.addi %0, %arg1 : i32
    %c0_i32 = arith.constant 0 : i32
    %2 = arith.minsi %1, %c0_i32 : i32
    %c0_i32_0 = arith.constant 0 : i32
    %c0_i32_1 = arith.constant 0 : i32
    return %2, %c0_i32_0 : i32, i32
  }
  func.func @transform_2(%arg0: i32, %arg1: i32) -> (i32, i32) {
    %c0_i32 = arith.constant 0 : i32
    %c0_i32_0 = arith.constant 0 : i32
    return %arg0, %c0_i32 : i32, i32
  }
}

</mosaic_0001>

<bundles_post_ra>
// kernel: tpu_custom_call.1
= control target key start
LH: loop header
LB: loop body
LE: loop exit
PB: predicated region body
PF: predicated region fallthrough
CT: control target
= control target key end

     0   :  { %7 = vsyncpa [#allocation3], 0  ;;  %s244_s0 = inlined_call_operand.hbm [shape: f32[16,128], index: 0, kind: input, shape index: {}]   ;;  %s245_s1 = inlined_call_operand.hbm [shape: f32[16,128], index: 1, kind: input, shape index: {}]   ;;  %s246_s2 = inlined_call_operand.hbm [shape: f32[8,128], index: 2, kind: output, shape index: {}]  }
   0x1   :  { %8 = vsyncpa [#allocation6], 0 }
   0x2   :  { %9 = vsyncpa [#allocation4], 0  ;;  %s20_s11 = sshll.u32 %s244_s0, 4  ;;  %s215_s12 = smov [#allocation2]   ;;  %s21_s11 = int_to_ptr.hbm [resolvable:$true] %s20_s11 }
   0x3   :  { %s22_s13 = sshll.u32 %s215_s12, 4  ;;  %s39_s16 = sshll.u32 %s245_s1, 4  ;;  %s23_s13 = int_to_ptr.vmem [resolvable:$true] %s22_s13  ;;  %s40_s16 = int_to_ptr.hbm [resolvable:$true] %s39_s16 }
   0x4   :  { %s216_s17 = smov 128   ;;  %s217_s18 = smov 8  }
   0x5   :  { %28 = dma.hbm_to_vmem [thread:$0]  %s21_s11, 256, %s23_s13, [#allocation3], %s216_s17, %s216_s17, %s217_s18  }
   0x6   :  { %s218_s19 = smov [#allocation5]  }
   0x7   :  { %s41_s20 = sshll.u32 %s218_s19, 4  ;;  %s42_s20 = int_to_ptr.vmem [resolvable:$true] %s41_s20 }
   0x8   :  { %47 = dma.hbm_to_vmem [thread:$0]  %s40_s16, 256, %s42_s20, [#allocation6], %s216_s17, %s216_s17, %s217_s18  }
   0x9   :  { %209 = dma.done.wait [#allocation3], 256  }
   0xa   :  { %210 = vsyncadd [#allocation3], 4294967040 }
   0xb   :  { %211 = dma.done.wait [#allocation6], 256  }
   0xc   :  { %212 = vsyncadd [#allocation6], 4294967040  ;;  %v75_v0 = vld [vmem:[#allocation2] sm:$0xff]  ;;  %v76_v1 = vld [vmem:[#allocation2 + $0x8] sm:$0xff]  ;;  %s219_s0 = smov [#allocation7]   ;;  %s108_s23 = sshll.u32 %s246_s2, 4  ;;  %s109_s23 = int_to_ptr.hbm [resolvable:$true] %s108_s23 }
   0xd   :  { %129 = vlog2.f32 %v75_v0  ;;  %v87_v2 = vsub.f32 1.0, %v75_v0  ;;  %v88_v3 = vsub.f32 1.0, %v76_v1  ;;  %v77_v4 = vld [vmem:[#allocation5] sm:$0xff]  ;;  %v78_v5 = vld [vmem:[#allocation5 + $0x8] sm:$0xff]  ;;  %s106_s1 = sshll.u32 %s219_s0, 4  ;;  %s107_s1 = int_to_ptr.vmem [resolvable:$true] %s106_s1 }
   0xe   :  { %131 = vlog2.f32 %v76_v1  ;;  %v85_v9 = vsub.f32 1.0, %v77_v4  ;;  %v86_v12 = vsub.f32 1.0, %v78_v5 }
   0xf   :  { %133 = vlog2.f32 %v87_v2 }
  0x10   :  { %135 = vlog2.f32 %v88_v3 }
  0x13   :  { %v130_v6 = vpop.eup %129 }
  0x14   :  { %v132_v7 = vpop.eup %131  ;;  %v80_v8 = vmul.f32 0.6931472, %v130_v6 }
  0x15   :  { %v134_v10 = vpop.eup %133  ;;  %v82_v11 = vmul.f32 0.6931472, %v132_v7 }
  0x16   :  { %v136_v13 = vpop.eup %135  ;;  %v83_v14 = vmul.f32 %v80_v8, %v77_v4  ;;  %v90_v15 = vmul.f32 0.6931472, %v134_v10 }
  0x17   :  { %v84_v16 = vmul.f32 %v82_v11, %v78_v5  ;;  %v92_v17 = vmul.f32 0.6931472, %v136_v13 }
  0x18   :  { %v93_v18 = vmul.f32 %v90_v15, %v85_v9 }
  0x19   :  { %v94_v19 = vmul.f32 %v92_v17, %v86_v12 }
  0x1a   :  { %v95_v20 = vadd.f32 %v93_v18, %v83_v14 }
  0x1b   :  { %v96_v21 = vadd.f32 %v94_v19, %v84_v16 }
  0x1d   :  { %v97_v22 = vadd.f32 %v96_v21, %v95_v20 }
  0x1f   :  { %100 = vst [vmem:[#allocation7] sm:$0xff] %v97_v22 }
  0x20   :  { %111 = dma.vmem_to_hbm [thread:$0]  %s107_s1, 128, %s109_s23, [#allocation4]  }
  0x21   :  { %213 = dma.done.wait [#allocation4], 128  }
  0x22   :  { %214 = vsyncadd [#allocation4], 4294967168 }
  0x23   :  { %116 = vsyncpa [#allocation3], 1 }
  0x24   :  { %117 = vsyncpa [#allocation6], 1 }
  0x25   :  { %118 = vsyncpa [#allocation4], 1 }

</bundles_post_ra>
